<compile_context>
chip_gen: v6e
topology: v6e:2x2x1
jax: 0.10.0
libtpu: 0.0.40
codegen_flags: <defaults>
</compile_context>

<pallas_src>
import functools

import jax
import jax.numpy as jnp
import numpy as np
from jax.experimental import pallas as pl
from jax.experimental.pallas import tpu as pltpu


def _round_up(n, m):
    return ((n + m - 1) // m) * m


def _layer_norm_kernel(x_ref, a_ref, b_ref, o_ref, *, eps, n_feat):
    """One (block_rows, D) tile: LayerNorm over the last (lane) axis.

    Matches torch semantics exactly:
      mean = x.mean(-1)
      std  = x.std(-1)            # unbiased: divide by (D - 1)
      out  = a_2 * (x - mean) / (std + eps) + b_2
    """
    x = x_ref[...].astype(jnp.float32)                       # (TR, D)
    mean = jnp.mean(x, axis=-1, keepdims=True)               # XLU lane reduce
    centered = x - mean
    denom = jnp.float32(max(n_feat - 1, 1))                  # unbiased (N-1)
    var = jnp.sum(centered * centered, axis=-1, keepdims=True) / denom
    std = jnp.sqrt(var)
    x_hat = centered / (std + jnp.float32(eps))              # eps on std, not var
    out = a_ref[...].astype(jnp.float32) * x_hat + b_ref[...].astype(jnp.float32)
    o_ref[...] = out.astype(o_ref.dtype)


def layer_norm_pallas(x, a_2, b_2, eps=1e-6, block_rows=512):
    """LayerNorm over the last axis of x (any leading shape)."""
    *lead, D = x.shape
    R = 1
    for s in lead:
        R *= s
    x2 = x.reshape(R, D)

    # Row tile: as big as reasonable (mem-bound kernel), multiple of 8 sublanes.
    br = min(block_rows, _round_up(R, 8))
    Rp = _round_up(R, br)
    if Rp != R:
        # Zero-padded rows normalize to b_2 harmlessly (0 / eps = 0); sliced off.
        x2 = jnp.pad(x2, ((0, Rp - R), (0, 0)))

    a2 = a_2.reshape(1, D)
    b2 = b_2.reshape(1, D)

    kernel = functools.partial(_layer_norm_kernel, eps=float(eps), n_feat=int(D))

    out = pl.pallas_call(
        kernel,
        out_shape=jax.ShapeDtypeStruct((Rp, D), x.dtype),
        grid_spec=pltpu.PrefetchScalarGridSpec(
            num_scalar_prefetch=0,
            grid=(Rp // br,),
            in_specs=[
                pl.BlockSpec((br, D), lambda i: (i, 0)),   # x row tile
                pl.BlockSpec((1, D), lambda i: (0, 0)),    # a_2 (gamma)
                pl.BlockSpec((1, D), lambda i: (0, 0)),    # b_2 (beta)
            ],
            out_specs=pl.BlockSpec((br, D), lambda i: (i, 0)),
        ),
        compiler_params=pltpu.CompilerParams(
            dimension_semantics=("parallel",),             # rows independent -> megacore
        ),
    )(x2, a2, b2)

    if Rp != R:
        out = out[:R]
    return out.reshape(*lead, D)


def layer_norm_ref(x, a_2, b_2, eps=1e-6):
    """Pure-JAX reference with identical (torch) semantics."""
    xf = x.astype(jnp.float32)
    D = x.shape[-1]
    mean = jnp.mean(xf, axis=-1, keepdims=True)
    centered = xf - mean
    var = jnp.sum(centered * centered, axis=-1, keepdims=True) / max(D - 1, 1)
    std = jnp.sqrt(var)
    out = a_2 * centered / (std + eps) + b_2
    return out.astype(x.dtype)


if __name__ == "__main__":
    key = jax.random.PRNGKey(0)
    k_x, k_a, k_b = jax.random.split(key, 3)

    # Small shapes consistent with the module: (batch=2, seq=8, features=256).
    B, S, D = 2, 8, 256
    x = jax.random.normal(k_x, (B, S, D), jnp.float32)
    # Non-trivial affine params (the module inits to ones/zeros; perturb to
    # actually exercise the scale/shift path).
    a_2 = 1.0 + 0.1 * jax.random.normal(k_a, (D,), jnp.float32)
    b_2 = 0.1 * jax.random.normal(k_b, (D,), jnp.float32)

    out = layer_norm_pallas(x, a_2, b_2, eps=1e-6)
    out = jax.block_until_ready(out)

    ref = jax.block_until_ready(layer_norm_ref(x, a_2, b_2, eps=1e-6))
    np.testing.assert_allclose(np.asarray(out), np.asarray(ref),
                               rtol=1e-5, atol=1e-5)
    print("KERNEL_OK")
</pallas_src>

<mosaic_0001>
module attributes {stable_mosaic.version = 11 : i64} {
  func.func @_layer_norm_kernel(%arg0: i32, %arg1: memref<16x256xf32, #tpu.memory_space<vmem>>, %arg2: memref<1x256xf32, #tpu.memory_space<vmem>>, %arg3: memref<1x256xf32, #tpu.memory_space<vmem>>, %arg4: memref<16x256xf32, #tpu.memory_space<vmem>>) attributes {dimension_semantics = [#tpu.dimension_semantics<parallel>], iteration_bounds = array<i64: 1>, scalar_prefetch = 0 : i64, scratch_operands = 0 : i64, tpu.core_type = #tpu.core_type<tc>, window_params = [{transform_indices = @transform_0, window_bounds = array<i64: 16, 256>}, {pipeline_mode = #tpu.pipeline_mode<synchronous>, transform_indices = @transform_1, window_bounds = array<i64: 1, 256>}, {pipeline_mode = #tpu.pipeline_mode<synchronous>, transform_indices = @transform_2, window_bounds = array<i64: 1, 256>}, {transform_indices = @transform_3, window_bounds = array<i64: 16, 256>}]} {
    %c0 = arith.constant 0 : index
    %c0_0 = arith.constant 0 : index
    %0 = vector.load %arg1[%c0, %c0_0] : memref<16x256xf32, #tpu.memory_space<vmem>>, vector<16x256xf32>
    %cst = arith.constant dense<0.000000e+00> : vector<16xf32>
    %1 = vector.multi_reduction <add>, %0, %cst [1] : vector<16x256xf32> to vector<16xf32>
    %2 = vector.shape_cast %1 : vector<16xf32> to vector<16x1xf32>
    %cst_1 = arith.constant 2.560000e+02 : f32
    %3 = vector.broadcast %cst_1 : f32 to vector<16x1xf32>
    %4 = arith.divf %2, %3 : vector<16x1xf32>
    %5 = vector.broadcast %4 : vector<16x1xf32> to vector<16x256xf32>
    %6 = arith.subf %0, %5 : vector<16x256xf32>
    %7 = arith.mulf %6, %6 : vector<16x256xf32>
    %cst_2 = arith.constant dense<0.000000e+00> : vector<16xf32>
    %8 = vector.multi_reduction <add>, %7, %cst_2 [1] : vector<16x256xf32> to vector<16xf32>
    %9 = vector.shape_cast %8 : vector<16xf32> to vector<16x1xf32>
    %cst_3 = arith.constant 2.550000e+02 : f32
    %10 = vector.broadcast %cst_3 : f32 to vector<16x1xf32>
    %11 = arith.divf %9, %10 : vector<16x1xf32>
    %12 = math.sqrt %11 : vector<16x1xf32>
    %cst_4 = arith.constant 9.99999997E-7 : f32
    %13 = vector.broadcast %cst_4 : f32 to vector<16x1xf32>
    %14 = arith.addf %12, %13 : vector<16x1xf32>
    %15 = vector.broadcast %14 : vector<16x1xf32> to vector<16x256xf32>
    %16 = arith.divf %6, %15 : vector<16x256xf32>
    %c0_5 = arith.constant 0 : index
    %c0_6 = arith.constant 0 : index
    %17 = vector.load %arg2[%c0_5, %c0_6] : memref<1x256xf32, #tpu.memory_space<vmem>>, vector<1x256xf32>
    %18 = vector.broadcast %17 : vector<1x256xf32> to vector<16x256xf32>
    %19 = arith.mulf %18, %16 : vector<16x256xf32>
    %c0_7 = arith.constant 0 : index
    %c0_8 = arith.constant 0 : index
    %20 = vector.load %arg3[%c0_7, %c0_8] : memref<1x256xf32, #tpu.memory_space<vmem>>, vector<1x256xf32>
    %21 = vector.broadcast %20 : vector<1x256xf32> to vector<16x256xf32>
    %22 = arith.addf %19, %21 : vector<16x256xf32>
    %c0_9 = arith.constant 0 : index
    %c0_10 = arith.constant 0 : index
    %23 = vector.load %arg4[%c0_9, %c0_10] : memref<16x256xf32, #tpu.memory_space<vmem>>, vector<16x256xf32>
    tpu.vector_store %arg4[%c0_9, %c0_10], %22 {strides = array<i32>} : memref<16x256xf32, #tpu.memory_space<vmem>>, vector<16x256xf32>,
    return
  }
  func.func @transform_0(%arg0: i32) -> (i32, i32) {
    %c0_i32 = arith.constant 0 : i32
    %c0_i32_0 = arith.constant 0 : i32
    return %arg0, %c0_i32 : i32, i32
  }
  func.func @transform_1(%arg0: i32) -> (i32, i32) {
    %c0_i32 = arith.constant 0 : i32
    %c0_i32_0 = arith.constant 0 : i32
    %c0_i32_1 = arith.constant 0 : i32
    return %c0_i32, %c0_i32_0 : i32, i32
  }
  func.func @transform_2(%arg0: i32) -> (i32, i32) {
    %c0_i32 = arith.constant 0 : i32
    %c0_i32_0 = arith.constant 0 : i32
    %c0_i32_1 = arith.constant 0 : i32
    return %c0_i32, %c0_i32_0 : i32, i32
  }
  func.func @transform_3(%arg0: i32) -> (i32, i32) {
    %c0_i32 = arith.constant 0 : i32
    %c0_i32_0 = arith.constant 0 : i32
    return %arg0, %c0_i32 : i32, i32
  }
}

</mosaic_0001>

<bundles_post_ra>
// kernel: tpu_custom_call.1
= control target key start
LH: loop header
LB: loop body
LE: loop exit
PB: predicated region body
PF: predicated region fallthrough
CT: control target
= control target key end

     0   :  { %8 = vsyncpa [#allocation3], 0  ;;  %s269_s0 = inlined_call_operand.hbm [shape: f32[16,256], index: 0, kind: input, shape index: {}]   ;;  %s270_s1 = inlined_call_operand.hbm [shape: f32[1,256], index: 1, kind: input, shape index: {}]   ;;  %s271_s2 = inlined_call_operand.vmem [shape: f32[1,256], index: 2, kind: input, shape index: {}]   ;;  %s272_s3 = inlined_call_operand.hbm [shape: f32[16,256], index: 3, kind: output, shape index: {}]  }
   0x1   :  { %9 = vsyncpa [#allocation6], 0 }
   0x2   :  { %10 = vsyncpa [#allocation4], 0  ;;  %s226_s12 = smov [#allocation2]  }
   0x3   :  { %s16_s13 = sshll.u32 %s226_s12, 4  ;;  %s17_s13 = int_to_ptr.vmem [resolvable:$true] %s16_s13 }
   0x4   :  { %s168_s14 = scalar_lea.vmem %s17_s13, 512  ;;  %p173_p1 = scmp.lt.s32.totalorder %s17_s13, %s17_s13 }
   0x5   :  { %p169_p0 = scmp.ne.s32.totalorder %s17_s13, %s168_s14  ;;  %p174_p2 = scmp.lt.s32.totalorder %s168_s14, %s168_s14 }
   0x7   :  { %p175_p3 = por %p174_p2, %p173_p1 }
   0x9   :  { %p176_p4 = pnand %p175_p3, %p169_p0 }
   0xb   :  { %179 = shalt.err (!%p176_p4)
}
   0xc   :  { %s227_s15 = smov 256   ;;  %s228_s16 = smov 16  }
   0xd   :  { %22 = dma.hbm_to_vmem [thread:$0]  %s269_s0, 512, %s17_s13, [#allocation3], %s227_s15, %s227_s15, %s228_s16  }
   0xe   :  { %s229_s19 = smov [#allocation5]  }
   0xf   :  { %s29_s20 = sshll.u32 %s229_s19, 4  ;;  %s30_s20 = int_to_ptr.vmem [resolvable:$true] %s29_s20 }
  0x10   :  { %s188_s21 = scalar_lea.vmem %s30_s20, 32  ;;  %p193_p6 = scmp.lt.s32.totalorder %s30_s20, %s30_s20 }
  0x11   :  { %p189_p5 = scmp.ne.s32.totalorder %s30_s20, %s188_s21  ;;  %p194_p7 = scmp.lt.s32.totalorder %s188_s21, %s188_s21 }
  0x13   :  { %p195_p8 = por %p194_p7, %p193_p6 }
  0x15   :  { %p196_p9 = pnand %p195_p8, %p189_p5 }
  0x17   :  { %199 = shalt.err (!%p196_p9)
}
  0x18   :  { %32 = dma.hbm_to_vmem [thread:$0]  %s270_s1, 32, %s30_s20, [#allocation6]  }
  0x19   :  { %220 = dma.done.wait [#allocation3], 512  }
  0x1a   :  { %221 = vsyncadd [#allocation3], 4294966784 }
  0x1b   :  { %222 = dma.done.wait [#allocation6], 32  }
  0x1c   :  { %223 = vsyncadd [#allocation6], 4294967264  ;;  %v41_v0 = vld [vmem:[#allocation2] sm:$0xff]  ;;  %v42_v1 = vld [vmem:[#allocation2 + $0x8] sm:$0xff]  ;;  %v95_v34 = vlaneseq  ;;  %s230_s24 = smov [#allocation7]  }
  0x1d   :  { %v43_v2 = vld [vmem:[#allocation2 + $0x10] sm:$0xff]  ;;  %v45_v3 = vadd.f32 %v42_v1, %v41_v0  ;;  %v44_v4 = vld [vmem:[#allocation2 + $0x18] sm:$0xff]  ;;  %v93_v40 = vld [vmem:[#allocation5] sm:$0x3]  ;;  %s134_s25 = sshll.u32 %s230_s24, 4  ;;  %s135_s25 = int_to_ptr.vmem [resolvable:$true] %s134_s25 }
  0x1e   :  { %v48_v5 = vadd.f32 %v44_v4, %v43_v2  ;;  %v96_v37 = vshrl.u32 %v95_v34, 7  ;;  %v109_v41 = vld [vmem:[%s271_s2] sm:$0x3]  ;;  %s200_s2 = scalar_lea.vmem %s135_s25, 512  ;;  %p205_p11 = scmp.lt.s32.totalorder %s135_s25, %s135_s25 }
  0x1f   :  { %46 = vadd.xlane.f32.xlu0 %v45_v3  ;;  %p201_p10 = scmp.ne.s32.totalorder %s135_s25, %s200_s2  ;;  %p206_p12 = scmp.lt.s32.totalorder %s200_s2, %s200_s2 }
  0x20   :  { %v97_v38 = vsub.s32 0, %v96_v37  ;;  %v101_v39 = vsub.s32 1, %v96_v37 }
  0x21   :  { %p207_p13 = por %p206_p12, %p205_p11 }
  0x22   :  { %v98_v42 = vrot.slane %v93_v40, %v97_v38  ;;  %v102_v43 = vrot.slane %v93_v40, %v101_v39  ;;  %v114_v47 = vrot.slane %v109_v41, %v97_v38  ;;  %v118_v48 = vrot.slane %v109_v41, %v101_v39 }
  0x23   :  { %49 = vadd.xlane.f32.xlu0 %v48_v5  ;;  %p208_p0 = pnand %p207_p13, %p201_p10 }
  0xa8   :  { %v47_v6 = vpop.xlane.xlu0 %46 }
  0xa9   :  { %v52_v7 = vmul.f32 0.00390625, %v47_v6 }
  0xab   :  { %v54_v8 = vsub.f32 %v41_v0, %v52_v7  ;;  %v55_v9 = vsub.f32 %v42_v1, %v52_v7 }
  0xac   :  { %v50_v10 = vpop.xlane.xlu0 %49 }
  0xad   :  { %v53_v11 = vmul.f32 0.00390625, %v50_v10  ;;  %v58_v12 = vmul.f32 %v54_v8, %v54_v8  ;;  %v59_v13 = vmul.f32 %v55_v9, %v55_v9 }
  0xaf   :  { %v56_v14 = vsub.f32 %v43_v2, %v53_v11  ;;  %v57_v15 = vsub.f32 %v44_v4, %v53_v11  ;;  %v62_v16 = vadd.f32 %v59_v13, %v58_v12 }
  0xb1   :  { %63 = vadd.xlane.f32.xlu1 %v62_v16  ;;  %v60_v17 = vmul.f32 %v56_v14, %v56_v14  ;;  %v61_v18 = vmul.f32 %v57_v15, %v57_v15 }
  0xb3   :  { %v65_v19 = vadd.f32 %v61_v18, %v60_v17 }
  0xb5   :  { %66 = vadd.xlane.f32.xlu1 %v65_v19 }
 0x13a   :  { %v64_v20 = vpop.xlane.xlu1 %63 }
 0x13b   :  { %v69_v21 = vmul.f32 0.003921569, %v64_v20 }
 0x13d   :  { %152 = vrsqrt.f32 %v69_v21  ;;  %vm73_vm0 = vcmp.eq.f32.partialorder %v69_v21, inf  ;;  %v76_v26 = vand.u32 2147483648, %v69_v21  ;;  %vm75_vm1 = vcmp.eq.f32.partialorder %v69_v21, 0.0 }
 0x13e   :  { %v67_v22 = vpop.xlane.xlu1 %66 }
 0x13f   :  { %v70_v23 = vmul.f32 0.003921569, %v67_v22 }
 0x141   :  { %154 = vrsqrt.f32 %v70_v23  ;;  %vm80_vm2 = vcmp.eq.f32.partialorder %v70_v23, inf  ;;  %v83_v32 = vand.u32 2147483648, %v70_v23  ;;  %vm82_vm3 = vcmp.eq.f32.partialorder %v70_v23, 0.0 }
 0x14a   :  { %v153_v24 = vpop.eup %152 }
 0x14b   :  { %v72_v25 = vmul.f32 %v153_v24, %v69_v21 }
 0x14d   :  { %v74_v27 = vsel %vm73_vm0, %v69_v21, %v72_v25 }
 0x14e   :  { %v155_v28 = vpop.eup %154  ;;  %v77_v29 = vsel %vm75_vm1, %v76_v26, %v74_v27 }
 0x14f   :  { %v85_v30 = vadd.f32 1e-06, %v77_v29  ;;  %v79_v31 = vmul.f32 %v155_v28, %v70_v23 }
 0x151   :  { %156 = vrcp.f32 %v85_v30  ;;  %v81_v33 = vsel %vm80_vm2, %v70_v23, %v79_v31 }
 0x152   :  { %v84_v35 = vsel %vm82_vm3, %v83_v32, %v81_v33 }
 0x153   :  { %v86_v36 = vadd.f32 1e-06, %v84_v35 }
 0x155   :  { %158 = vrcp.f32 %v86_v36 }
 0x15e   :  { %v157_v44 = vpop.eup %156 }
 0x15f   :  { %v88_v45 = vmul.f32 %v157_v44, %v54_v8  ;;  %v89_v46 = vmul.f32 %v157_v44, %v55_v9 }
 0x161   :  { %v105_v49 = vmul.f32 %v98_v42, %v88_v45  ;;  %v106_v50 = vmul.f32 %v102_v43, %v89_v46 }
 0x162   :  { %v159_v51 = vpop.eup %158 }
 0x163   :  { %v91_v52 = vmul.f32 %v159_v51, %v56_v14  ;;  %v92_v53 = vmul.f32 %v159_v51, %v57_v15  ;;  %v121_v54 = vadd.f32 %v114_v47, %v105_v49  ;;  %v122_v55 = vadd.f32 %v118_v48, %v106_v50 }
 0x165   :  { %v107_v56 = vmul.f32 %v98_v42, %v91_v52  ;;  %v108_v57 = vmul.f32 %v102_v43, %v92_v53  ;;  %125 = vst [vmem:[#allocation7] sm:$0xff] %v121_v54  ;;  %126 = vst [vmem:[#allocation7 + $0x8] sm:$0xff] %v122_v55 }
 0x167   :  { %v123_v58 = vadd.f32 %v114_v47, %v107_v56  ;;  %v124_v59 = vadd.f32 %v118_v48, %v108_v57 }
 0x169   :  { %127 = vst [vmem:[#allocation7 + $0x10] sm:$0xff] %v123_v58  ;;  %128 = vst [vmem:[#allocation7 + $0x18] sm:$0xff] %v124_v59 }
 0x16a   :  { %211 = shalt.err (!%p208_p0)
}
 0x16b   :  { %140 = dma.vmem_to_hbm [thread:$0]  %s135_s25, 512, %s272_s3, [#allocation4], %s227_s15, %s227_s15, %s228_s16  }
 0x16c   :  { %224 = dma.done.wait [#allocation4], 512  }
 0x16d   :  { %225 = vsyncadd [#allocation4], 4294966784 }
 0x16e   :  { %144 = vsyncpa [#allocation3], 1 }
 0x16f   :  { %145 = vsyncpa [#allocation6], 1 }
 0x170   :  { %146 = vsyncpa [#allocation4], 1 }

</bundles_post_ra>
